<compile_context>
chip_gen: v6e
topology: v6e:2x2x1
jax: 0.10.0
libtpu: 0.0.40
codegen_flags: <defaults>
</compile_context>

<pallas_src>
import functools

import jax
import jax.numpy as jnp
from jax import lax
from jax.experimental import pallas as pl
from jax.experimental.pallas import tpu as pltpu

ALPHA = 1.0
LOSS_WEIGHT = 1.0


def _vmem_limit_bytes():
    """Per-generation VMEM limit (v5e/v6e: 128 MiB physical, v7x: 64 MiB)."""
    cap = 64 * 1024 * 1024  # conservative default = v7x physical VMEM
    try:
        cap = int(pltpu.get_tpu_info().vmem_capacity_bytes)
    except Exception:
        pass
    # Leave headroom for Mosaic-internal scratch; never ask for more than 96 MiB.
    return int(min(cap * 3 // 4, 96 * 1024 * 1024))


def _pick_block_channels(c, hw, itemsize, vmem_limit):
    """Channel-block size: biggest block fitting ~1/8 of the VMEM limit.

    Sizing uses f32 bytes because the in-kernel upcast + roll/diff temporaries
    (all f32) dominate the footprint regardless of the input dtype; the /8
    factor covers double-buffered inputs plus those temporaries.
    """
    budget = vmem_limit // 8
    per_ch = hw * 4
    fit = max(1, budget // per_ch)
    if fit >= c:
        return c  # whole channel axis in a single block (common case)
    # Channel axis is the sublane (second-minor) dim of the cam block: keep it
    # aligned to the packed tile ((8,128) f32, (16,128) bf16, (32,128) int8).
    align = 8 * max(1, 4 // itemsize)
    bc = max(align, (fit // align) * align)
    # TODO(synk): spatial (H) tiling with a 1-row halo for planes so large
    # that even one aligned channel block overflows v7x's 64 MiB VMEM.
    return min(bc, c)


def _interp_matrix(out_size, in_size):
    """Bilinear interpolation weights (PyTorch align_corners=False) as a matrix."""
    scale = in_size / out_size
    src = (jnp.arange(out_size, dtype=jnp.float32) + 0.5) * scale - 0.5
    src = jnp.maximum(src, 0.0)  # PyTorch clamps negative src to 0
    i0 = jnp.clip(jnp.floor(src).astype(jnp.int32), 0, in_size - 1)
    i1 = jnp.minimum(i0 + 1, in_size - 1)
    lam = jnp.clip(src - i0.astype(jnp.float32), 0.0, 1.0)
    rows = jnp.arange(out_size)
    m = jnp.zeros((out_size, in_size), jnp.float32)
    m = m.at[rows, i0].add(1.0 - lam)
    m = m.at[rows, i1].add(lam)
    return m


def _resize_bilinear_nchw(x, out_h, out_w):
    """F.interpolate(mode='bilinear', align_corners=False) as two small matmuls."""
    wy = _interp_matrix(out_h, x.shape[2])
    wx = _interp_matrix(out_w, x.shape[3])
    return jnp.einsum("hy,ncyx,wx->nchw", wy, x.astype(jnp.float32), wx,
                      precision=lax.Precision.HIGHEST)


def _depth_loss_kernel(depth_ref, cam_ref, out_ref, *, width, use_xlu_roll, alpha):
    """One (image, channel-block) grid point.

    depth_ref: (1, 1, HW)  f32     flattened (H, W) depth plane of image n
    cam_ref:   (1, BC, HW) native  flattened cam channels (upcast after load)
    out_ref:   (1, 1, 1, 1) f32    partial sum for this (n, cb) block
    """
    hw = depth_ref.shape[-1]

    def flat_roll(x, shift):
        # out[..., f] = x[..., (f - shift) % hw]   (jnp.roll along the flat axis)
        shift = shift % hw
        if shift == 0:
            return x
        if use_xlu_roll:
            # Lane rotation on the XLU -> vld/vst and VALU slots stay free.
            return pltpu.roll(x, shift, axis=x.ndim - 1)
        # Fallback for lane-unaligned planes (HW % 128 != 0).
        hi = lax.slice_in_dim(x, hw - shift, hw, axis=x.ndim - 1)
        lo = lax.slice_in_dim(x, 0, hw - shift, axis=x.ndim - 1)
        return jnp.concatenate([hi, lo], axis=x.ndim - 1)

    # torch.roll(x, 1, dims=2) == flat roll by W.
    # torch.roll(x, 1, dims=3) == flat roll by 1, except the w==0 column which
    # must wrap within its own row (value x[f + W - 1]  == flat roll by 1-W).
    col = lax.broadcasted_iota(jnp.int32, (1, 1, hw), 2)
    wrap = (col % width) == 0

    def neighbour_diffs(x):
        d_h = jnp.abs(x - flat_roll(x, width))
        r1 = flat_roll(x, 1)
        rw = flat_roll(x, 1 - width)
        d_w = jnp.abs(x - jnp.where(wrap, rw, r1))
        return d_h + d_w

    d = depth_ref[...]                                  # (1, 1, HW) f32
    wgt = jnp.exp(-alpha * neighbour_diffs(d))          # EUP; recomputed per block

    cam = cam_ref[...].astype(jnp.float32)              # upcast after the load
    cd = neighbour_diffs(cam)                           # (1, BC, HW)

    out_ref[...] = jnp.sum(wgt * cd, axis=(1, 2), keepdims=True).reshape(1, 1, 1, 1)


def depth_loss_forward(cls_score, label, sal, cam, depth_maps):
    """DepthLoss(depth=True).forward — cls_score/label/sal are unused by the
    depth branch (kept to mirror the PyTorch call signature)."""
    del cls_score, label, sal
    n, c, h, w = cam.shape
    hw = h * w

    # Single-plane resized depth (matmul form); the C-fold repeat and the f32
    # upcast of cam are never materialized in HBM.
    depth_flat = _resize_bilinear_nchw(depth_maps, h, w).reshape(n, 1, hw)

    # Flatten spatial dims (free, layout-compatible reshape): lane axis = HW.
    cam_flat = cam.reshape(n, c, hw)

    vmem_limit = _vmem_limit_bytes()
    bc = _pick_block_channels(c, hw, cam.dtype.itemsize, vmem_limit)
    c_pad = ((c + bc - 1) // bc) * bc
    if c_pad != c:
        # Zero channels contribute exactly 0 to the sum; mean divides by the
        # ORIGINAL element count below.
        # TODO(synk): replace this pad (an HBM copy of cam) with an in-kernel
        # tail-channel mask.
        cam_flat = jnp.pad(cam_flat, ((0, 0), (0, c_pad - c), (0, 0)))
    num_cb = c_pad // bc

    use_xlu_roll = (hw % 128) == 0
    kernel = functools.partial(_depth_loss_kernel, width=w,
                               use_xlu_roll=use_xlu_roll, alpha=ALPHA)

    cost = pl.CostEstimate(
        flops=12 * n * c_pad * hw,
        transcendentals=n * num_cb * hw,
        bytes_accessed=(n * c_pad * hw * cam.dtype.itemsize
                        + n * hw * 4 + n * num_cb * 4),
    )

    partials = pl.pallas_call(
        kernel,
        out_shape=jax.ShapeDtypeStruct((n, num_cb, 1, 1), jnp.float32),
        grid_spec=pltpu.PrefetchScalarGridSpec(
            num_scalar_prefetch=0,
            grid=(n, num_cb),
            in_specs=[
                # depth: same block for every channel block of image n
                # (no re-DMA between consecutive steps with the same index).
                pl.BlockSpec((1, 1, hw), lambda i, j: (i, 0, 0)),
                # cam: batched channel block, channels on sublanes, HW on lanes.
                pl.BlockSpec((1, bc, hw), lambda i, j: (i, j, 0)),
            ],
            out_specs=pl.BlockSpec((1, 1, 1, 1), lambda i, j: (i, j, 0, 0)),
        ),
        compiler_params=pltpu.CompilerParams(
            # Every (image, channel-block) grid point is independent (exp
            # weights recomputed per block) -> both axes parallel, so v7x's
            # two TensorCores are used even for small N.
            dimension_semantics=("parallel", "parallel"),
            vmem_limit_bytes=vmem_limit,
        ),
        cost_estimate=cost,
    )(depth_flat, cam_flat)

    total = n * c * h * w
    return jnp.sum(partials) * (LOSS_WEIGHT / total)


def _reference(cam, depth_maps):
    """Pure-JAX reference matching the PyTorch depth_loss (depth branch)."""
    n, c, h, w = cam.shape
    depth = jnp.broadcast_to(_resize_bilinear_nchw(depth_maps, h, w), (n, c, h, w))
    camf = cam.astype(jnp.float32)
    dd = (jnp.abs(depth - jnp.roll(depth, 1, axis=2))
          + jnp.abs(depth - jnp.roll(depth, 1, axis=3)))
    cd = (jnp.abs(camf - jnp.roll(camf, 1, axis=2))
          + jnp.abs(camf - jnp.roll(camf, 1, axis=3)))
    return LOSS_WEIGHT * jnp.mean(jnp.exp(-ALPHA * dd) * cd)


if __name__ == "__main__":
    key = jax.random.PRNGKey(0)
    k1, k2, k3, k4 = jax.random.split(key, 4)

    N, C, H, W = 2, 4, 16, 16
    DH, DW = 8, 8  # low-res depth maps, upsampled to (H, W)

    cls_score = jax.random.normal(k1, (N, C, H, W), dtype=jnp.float32)  # unused by depth branch
    label = jax.random.randint(k2, (N, H, W), 0, C)                      # unused by depth branch
    sal = jax.random.uniform(k3, (N, 1, H, W), dtype=jnp.float32)        # unused by depth branch
    cam = jax.random.uniform(k4, (N, C, H, W), dtype=jnp.float32)
    depth_maps = jax.random.uniform(jax.random.fold_in(key, 5),
                                    (N, 1, DH, DW), dtype=jnp.float32) * 10.0

    loss = depth_loss_forward(cls_score, label, sal, cam, depth_maps)
    loss = jax.block_until_ready(loss)

    ref = jax.block_until_ready(_reference(cam, depth_maps))
    assert jnp.allclose(loss, ref, rtol=1e-5, atol=1e-6), (loss, ref)

    print("KERNEL_OK")
</pallas_src>

<mosaic_0001>
module attributes {stable_mosaic.version = 11 : i64} {
  func.func @_depth_loss_kernel(%arg0: i32, %arg1: i32, %arg2: memref<1x1x256xf32, #tpu.memory_space<vmem>>, %arg3: memref<1x4x256xf32, #tpu.memory_space<vmem>>, %arg4: memref<1x1x1x1xf32, #tpu.memory_space<vmem>>) attributes {dimension_semantics = [#tpu.dimension_semantics<parallel>, #tpu.dimension_semantics<parallel>], iteration_bounds = array<i64: 2, 1>, scalar_prefetch = 0 : i64, scratch_operands = 0 : i64, tpu.core_type = #tpu.core_type<tc>, window_params = [{transform_indices = @transform_0, window_bounds = array<i64: 1, 1, 256>}, {transform_indices = @transform_1, window_bounds = array<i64: 1, 4, 256>}, {transform_indices = @transform_2, window_bounds = array<i64: 1, 1, 1, 1>}]} {
    %0 = tpu.iota {dimensions = array<i32: 2>} : vector<1x1x256xi32>
    %c16_i32 = arith.constant 16 : i32
    %c0_i32 = arith.constant 0 : i32
    %1 = arith.cmpi eq, %c16_i32, %c0_i32 : i32
    %c1_i32 = arith.constant 1 : i32
    %2 = arith.select %1, %c1_i32, %c16_i32 : i32
    %3 = vector.broadcast %2 : i32 to vector<1x1x256xi32>
    %4 = arith.remsi %0, %3 : vector<1x1x256xi32>
    %c0_i32_0 = arith.constant 0 : i32
    %5 = vector.broadcast %c0_i32_0 : i32 to vector<1x1x256xi32>
    %6 = arith.cmpi ne, %4, %5 : vector<1x1x256xi32>
    %c0_i32_1 = arith.constant 0 : i32
    %7 = vector.broadcast %c0_i32_1 : i32 to vector<1x1x256xi32>
    %8 = arith.cmpi slt, %4, %7 : vector<1x1x256xi32>
    %c0_i32_2 = arith.constant 0 : i32
    %9 = arith.cmpi slt, %2, %c0_i32_2 : i32
    %10 = vector.broadcast %9 : i1 to vector<1x1x256xi1>
    %11 = vector.broadcast %10 : vector<1x1x256xi1> to vector<1x1x256xi1>
    %12 = arith.xori %8, %11 : vector<1x1x256xi1>
    %13 = arith.andi %12, %6 : vector<1x1x256xi1>
    %14 = vector.broadcast %2 : i32 to vector<1x1x256xi32>
    %15 = arith.addi %4, %14 : vector<1x1x256xi32>
    %16 = arith.select %13, %15, %4 : vector<1x1x256xi1>, vector<1x1x256xi32>
    %c0_i32_3 = arith.constant 0 : i32
    %17 = vector.broadcast %c0_i32_3 : i32 to vector<1x1x256xi32>
    %18 = arith.cmpi eq, %16, %17 : vector<1x1x256xi32>
    %c0 = arith.constant 0 : index
    %c0_4 = arith.constant 0 : index
    %c0_5 = arith.constant 0 : index
    %19 = vector.load %arg2[%c0, %c0_4, %c0_5] : memref<1x1x256xf32, #tpu.memory_space<vmem>>, vector<1x1x256xf32>
    %c16_i32_6 = arith.constant 16 : i32
    %20 = tpu.dynamic_rotate %19 by %c16_i32_6 dim 2 : vector<1x1x256xf32>, i32 -> vector<1x1x256xf32>
    %21 = arith.subf %19, %20 : vector<1x1x256xf32>
    %22 = math.absf %21 : vector<1x1x256xf32>
    %c1_i32_7 = arith.constant 1 : i32
    %23 = tpu.dynamic_rotate %19 by %c1_i32_7 dim 2 : vector<1x1x256xf32>, i32 -> vector<1x1x256xf32>
    %c241_i32 = arith.constant 241 : i32
    %24 = tpu.dynamic_rotate %19 by %c241_i32 dim 2 : vector<1x1x256xf32>, i32 -> vector<1x1x256xf32>
    %25 = arith.select %18, %24, %23 : vector<1x1x256xi1>, vector<1x1x256xf32>
    %26 = arith.subf %19, %25 : vector<1x1x256xf32>
    %27 = math.absf %26 : vector<1x1x256xf32>
    %28 = arith.addf %22, %27 : vector<1x1x256xf32>
    %cst = arith.constant -1.000000e+00 : f32
    %29 = vector.broadcast %cst : f32 to vector<1x1x256xf32>
    %30 = arith.mulf %29, %28 : vector<1x1x256xf32>
    %31 = math.exp %30 : vector<1x1x256xf32>
    %c0_8 = arith.constant 0 : index
    %c0_9 = arith.constant 0 : index
    %c0_10 = arith.constant 0 : index
    %32 = vector.load %arg3[%c0_8, %c0_9, %c0_10] : memref<1x4x256xf32, #tpu.memory_space<vmem>>, vector<1x4x256xf32>
    %c16_i32_11 = arith.constant 16 : i32
    %33 = tpu.dynamic_rotate %32 by %c16_i32_11 dim 2 : vector<1x4x256xf32>, i32 -> vector<1x4x256xf32>
    %34 = arith.subf %32, %33 : vector<1x4x256xf32>
    %35 = math.absf %34 : vector<1x4x256xf32>
    %c1_i32_12 = arith.constant 1 : i32
    %36 = tpu.dynamic_rotate %32 by %c1_i32_12 dim 2 : vector<1x4x256xf32>, i32 -> vector<1x4x256xf32>
    %c241_i32_13 = arith.constant 241 : i32
    %37 = tpu.dynamic_rotate %32 by %c241_i32_13 dim 2 : vector<1x4x256xf32>, i32 -> vector<1x4x256xf32>
    %38 = vector.shape_cast %18 : vector<1x1x256xi1> to vector<1x1x256xi1>
    %39 = vector.broadcast %38 : vector<1x1x256xi1> to vector<1x4x256xi1>
    %40 = arith.select %39, %37, %36 : vector<1x4x256xi1>, vector<1x4x256xf32>
    %41 = arith.subf %32, %40 : vector<1x4x256xf32>
    %42 = math.absf %41 : vector<1x4x256xf32>
    %43 = arith.addf %35, %42 : vector<1x4x256xf32>
    %44 = vector.broadcast %31 : vector<1x1x256xf32> to vector<1x4x256xf32>
    %45 = arith.mulf %44, %43 : vector<1x4x256xf32>
    %cst_14 = arith.constant dense<0.000000e+00> : vector<1xf32>
    %46 = vector.multi_reduction <add>, %45, %cst_14 [1, 2] : vector<1x4x256xf32> to vector<1xf32>
    %47 = vector.shape_cast %46 : vector<1xf32> to vector<1x1x1xf32>
    %48 = vector.shape_cast %47 : vector<1x1x1xf32> to vector<1x1x1x1xf32>
    %c0_15 = arith.constant 0 : index
    %c0_16 = arith.constant 0 : index
    %c0_17 = arith.constant 0 : index
    %c0_18 = arith.constant 0 : index
    %49 = vector.load %arg4[%c0_15, %c0_16, %c0_17, %c0_18] : memref<1x1x1x1xf32, #tpu.memory_space<vmem>>, vector<1x1x1x1xf32>
    tpu.vector_store %arg4[%c0_15, %c0_16, %c0_17, %c0_18], %48 {strides = array<i32>} : memref<1x1x1x1xf32, #tpu.memory_space<vmem>>, vector<1x1x1x1xf32>,
    return
  }
  func.func @transform_0(%arg0: i32, %arg1: i32) -> (i32, i32, i32) {
    %c0_i32 = arith.constant 0 : i32
    %c0_i32_0 = arith.constant 0 : i32
    %c0_i32_1 = arith.constant 0 : i32
    return %arg0, %c0_i32, %c0_i32_0 : i32, i32, i32
  }
  func.func @transform_1(%arg0: i32, %arg1: i32) -> (i32, i32, i32) {
    %c0_i32 = arith.constant 0 : i32
    %c0_i32_0 = arith.constant 0 : i32
    return %arg0, %arg1, %c0_i32 : i32, i32, i32
  }
  func.func @transform_2(%arg0: i32, %arg1: i32) -> (i32, i32, i32, i32) {
    %c0_i32 = arith.constant 0 : i32
    %c0_i32_0 = arith.constant 0 : i32
    %c0_i32_1 = arith.constant 0 : i32
    return %arg0, %arg1, %c0_i32, %c0_i32_0 : i32, i32, i32, i32
  }
}

</mosaic_0001>

<bundles_post_ra>
// kernel: tpu_custom_call.1
= control target key start
LH: loop header
LB: loop body
LE: loop exit
PB: predicated region body
PF: predicated region fallthrough
CT: control target
= control target key end

     0   :  { %7 = vsyncpa [#allocation3], 0  ;;  %s897_s0 = inlined_call_operand.hbm [shape: f32[2,1,256], index: 0, kind: input, shape index: {}]   ;;  %s898_s1 = inlined_call_operand.hbm [shape: f32[2,4,256], index: 1, kind: input, shape index: {}]   ;;  %s899_s2 = inlined_call_operand.vmem [shape: f32[2,1,1,1], index: 2, kind: output, shape index: {}]  }
   0x1   :  { %9 = vsyncpa [#allocation3 + $0x1], 0 }
   0x2   :  { %10 = vsyncpa [#allocation5], 0 }
   0x3   :  { %12 = vsyncpa [#allocation5 + $0x1], 0  ;;  %s719_s9 = smov 0   ;;  %s721_s10 = smov 0  }
   0x4   :  { %s723_s11 = smov 0   ;;  %s725_s12 = smov 0  }
   0x5   :  { %s727_s13 = smov 0   ;;  %s729_s14 = smov 0  }
   0x6 LB: > { %s502_s15 = sadd.s32 4294967295, %s696_s14   ;;  %s30_s16 = sadd.s32 1, %s692_s13  ;;  %s696_s14 = sphi %s729_s14, %s18_s14   ;;  %s692_s13 = sphi %s727_s13, %s912_s13   ;;  %s688_s12 = sphi %s725_s12, %s911_s12   ;;  %s684_s11 = sphi %s723_s11, %s910_s11   ;;  %s680_s10 = sphi %s721_s10, %s909_s10   ;;  %s676_s9 = sphi %s719_s9, %s908_s9  }
   0x7   : > { %p32_p0 = scmp.ge.s32.totalorder %s30_s16, 2  ;;  %s37_s17 = sadd.s32 1, %s684_s11 }
   0x8   : > { %p44_p1 = scmp.ne.s32.totalorder %s684_s11, %s680_s10  ;;  %p45_p2 = scmp.eq.s32.totalorder %s696_s14, 0 }
   0x9   : > { %s914_s16 = smov (%p32_p0, %s30_s16), 0  ;;  %p50_p4 = scmp.ne.s32.totalorder %s680_s10, %s676_s9 }
   0xa   : > { %p755_p3 = por %p45_p2, %p44_p1  ;;  %s34_s19 = ssub.s32 %s692_s13, %s914_s16 }
   0xb   : > { %p51_p5 = scmp.eq.s32.totalorder %s502_s15, 0  ;;  %p35_p6 = scmp.eq.s32.totalorder %s34_s19, 0 }
   0xc   : > { %p530_p8 = scmp.lt.s32.totalorder %s696_s14, 2  ;;  %s771_s22 = sand.u32 1, %s684_s11  }
   0xd   : > { %p762_p7 = por %p51_p5, %p50_p4  ;;  %s517_s23 = sshll.u32 %s692_s13, 5 }
   0xe   : > { %s768_s21 = scalar_select %p35_p6, %s684_s11, %s37_s17  }
   0xf   : > { %s506_s24 = sshll.u32 %s771_s22, 1  ;;  %s140_s27 = scalar_lea.hbm %s897_s0, %s517_s23 }
  0x10   : > { %s134_s28 = scalar_lea.vmem [#allocation2], %s506_s24  ;;  %p780_p9 = pnand %p530_p8, %p755_p3 }
  0x11   : > { %s142_s29 = sshll.u32 %s134_s28, 4  ;;  %p512_p10 = scmp.ge.s32.totalorder %s696_s14, 1  ;;  %s143_s29 = int_to_ptr.vmem [resolvable:$true] %s142_s29 }
  0x12   : > { %p168_p11 = scmp.lt.s32.totalorder %s696_s14, 3  ;;  %s131_s3 = scalar_lea.sflag [#allocation3], %s771_s22 }
  0x13   : > { %p588_p12 = pneg %p780_p9  ;;  %s599_s4 = scalar_lea.vmem %s143_s29, 32 }
  0x14   : > { %p600_p13 = scmp.ne.s32.totalorder %s143_s29, %s599_s4  ;;  %s698_s5 = smov [#allocation2]  }
  0x15   : > { %s604_s6 = sshll.u32 %s698_s5, 4  ;;  %s605_s6 = int_to_ptr.vmem [resolvable:$false] %s604_s6 }
  0x16   : > { %p602_p0 = pnand %p600_p13, %p588_p12  ;;  %s606_s7 = scalar_lea.vmem %s605_s6, 64 }
  0x17   : > { %p607_p2 = scmp.lt.s32.totalorder %s143_s29, %s605_s6  ;;  %p608_p3 = scmp.lt.s32.totalorder %s606_s7, %s599_s4 }
  0x18   : > { %p603_p1 = pneg %p602_p0 }
  0x19   : > { %p609_p4 = por %p608_p3, %p607_p2 }
  0x1b   : > { %p610_p5 = pnand %p609_p4, %p603_p1 }
  0x1d   : > { %613 = shalt.err (!%p610_p5)
}
  0x1e   : > { %526 = dma.hbm_to_vmem [thread:$0]  (!%p780_p9), %s140_s27, 32, %s143_s29, %s131_s3  }
  0x1f   : > { %p798_p6 = pnand %p512_p10, %p168_p11  ;;  %s509_s9 = sshll.u32 %s771_s22, 3 }
  0x20   : > { %s518_s15 = sshll.u32 %s692_s13, 7  ;;  %s153_s23 = scalar_lea.vmem [#allocation4], %s509_s9 }
  0x21   : > { %s161_s19 = scalar_lea.hbm %s898_s1, %s518_s15  ;;  %s163_s24 = sshll.u32 %s153_s23, 4  ;;  %s164_s24 = int_to_ptr.vmem [resolvable:$true] %s163_s24 }
  0x22   : > { %s150_s25 = scalar_lea.sflag [#allocation5], %s771_s22  ;;  %s627_s26 = scalar_lea.vmem %s164_s24, 128 }
  0x23   : > { %p628_p8 = scmp.ne.s32.totalorder %s164_s24, %s627_s26  ;;  %s699_s27 = smov [#allocation4]  }
  0x24   : > { %s632_s28 = sshll.u32 %s699_s27, 4  ;;  %s633_s28 = int_to_ptr.vmem [resolvable:$false] %s632_s28 }
  0x25   : > { %p630_p13 = pnand %p628_p8, %p588_p12  ;;  %s634_s29 = scalar_lea.vmem %s633_s28, 256 }
  0x26   : > { %p635_p10 = scmp.lt.s32.totalorder %s164_s24, %s633_s28  ;;  %p636_p11 = scmp.lt.s32.totalorder %s634_s29, %s627_s26 }
  0x27   : > { %p631_p0 = pneg %p630_p13 }
  0x28   : > { %p637_p1 = por %p636_p11, %p635_p10 }
  0x2a   : > { %p638_p2 = pnand %p637_p1, %p631_p0 }
  0x2c   : > { %641 = shalt.err (!%p638_p2)
}
  0x2d   : > { %529 = dma.hbm_to_vmem [thread:$0]  (!%p780_p9), %s161_s19, 128, %s164_s24, %s150_s25  }
  0x2e   : > { %172 = sbr.rel (%p798_p6) target bundleno = 375 (0x177), region = 28  ;;  %s174_s22 = sand.u32 (!%p798_p6), 1, %s680_s10  }
  0x2f   : > { %s513_s3 = sshll.u32 (!%p798_p6), %s174_s22, 1  ;;  %s175_s4 = scalar_lea.sflag (!%p798_p6), [#allocation3], %s174_s22 }
  0x30   : > { %s178_s5 = scalar_lea.vmem (!%p798_p6), [#allocation2], %s513_s3 }
  0x33   : > { %667 = dma.done.wait (%p762_p7), %s175_s4, 32  }
  0x34   : > { %669 = vsyncadd (%p762_p7), %s175_s4, 4294967264  ;;  %s514_s6 = sshll.u32 %s174_s22, 3  ;;  %s184_s7 = scalar_lea.sflag [#allocation5], %s174_s22 }
  0x35   : > { %s187_s9 = scalar_lea.vmem [#allocation4], %s514_s6 }
  0x36   : > { %671 = dma.done.wait (%p762_p7), %s184_s7, 128  }
  0x37   : > { %673 = vsyncadd (%p762_p7), %s184_s7, 4294967168  ;;  %v220_v0 = vlaneseq  ;;  %v249_v4 = vld [vmem:[%s178_s5] sm:$0x3]  ;;  %s700_s30 = smov 113   ;;  %s701_s8 = smov 1   ;;  %v832_v7 = vld [vmem:[%s187_s9] sm:$0xff] }
  0x38   : > { %s702_s20 = smov 16   ;;  %v330_v8 = vcombine.high %v832_v7, %v832_v7  ;;  %v703_v11 = vmov 1966171168   ;;  %vm385_vm5 = vcmask 1043456   ;;  %p214_p7 = scmp.lt.s32.totalorder %s688_s12, 1  ;;  %vm397_vm6 = vcmask 0  }
  0x39   : > { %v824_v1 = vshrl.u32 %v220_v0, 7  ;;  %v221_v9 = vand.u32 127, %v220_v0  ;;  %v272_v12 = vunpack.c.l.s4 %v703_v11 }
  0x3a   : > { %s916_s12 = smov (!%p214_p7, %s688_s12), 1 }
  0x3b   : > { %v253_v2 = vsub.s32 0, %v824_v1  ;;  %v257_v3 = vsub.s32 1, %v824_v1  ;;  %v222_v10 = vadd.s32 128, %v221_v9  ;;  %v227_v13 = vand.u32 15, %v221_v9  ;;  %s219_s18 = scalar_lea.vmem %s899_s2, %s916_s12 }
  0x3c   : > { %v273_v17 = vunpack.c.0.s8 %v272_v12  ;;  %vm299_vm0 = vcmp.lt.s32.totalorder %v221_v9, 113  ;;  %vm292_vm1 = vcmp.lt.s32.totalorder %v221_v9, 1  ;;  %vm265_vm4 = vcmp.lt.s32.totalorder %v221_v9, 16 }
  0x3d   : > { %v254_v5 = vrot.slane %v249_v4, %v253_v2  ;;  %v258_v6 = vrot.slane %v249_v4, %v257_v3  ;;  %v234_v14 = vand.u32 15, %v222_v10  ;;  %vm839_vm2 = vcmp.eq.s32.totalorder %v227_v13, 0 }
  0x3e   : > { %v276_v21 = vsub.s32 %v273_v17, %v824_v1 }
  0x3f   : > { %295 = vrot.lane.b32.xlu1 %v254_v5, %s700_s30  ;;  %288 = vrot.lane.b32.xlu0 %v254_v5, %s701_s8  ;;  %vm843_vm3 = vcmp.eq.s32.totalorder %v234_v14, 0 }
  0x43   : > { %297 = vrot.lane.b32.xlu1 %v258_v6, %s700_s30  ;;  %290 = vrot.lane.b32.xlu0 %v258_v6, %s701_s8 }
  0x47   : > { %263 = vrot.lane.b32.xlu1 %v258_v6, %s702_s20  ;;  %261 = vrot.lane.b32.xlu0 %v254_v5, %s702_s20 }
  0x4b   : > { %346 = vrot.lane.b32.xlu1 %v330_v8, %s701_s8  ;;  %344 = vrot.lane.b32.xlu0 %v832_v7, %s701_s8 }
  0x4f   : > { %352 = vrot.lane.b32.xlu1 %v330_v8, %s700_s30  ;;  %350 = vrot.lane.b32.xlu0 %v832_v7, %s700_s30 }
  0x53   : > { %334 = vrot.lane.b32.xlu1 %v330_v8, %s702_s20  ;;  %332 = vrot.lane.b32.xlu0 %v832_v7, %s702_s20 }
  0xb1   : > { %v296_v15 = vpop.permute.xlu1 %295  ;;  %v289_v16 = vpop.permute.xlu0 %288 }
  0xb5   : > { %v298_v20 = vpop.permute.xlu1 %297  ;;  %v291_v22 = vpop.permute.xlu0 %290 }
  0xb6   : > { %v300_v23 = vsel %vm299_vm0, %v296_v15, %v298_v20  ;;  %v301_v24 = vsel %vm299_vm0, %v298_v20, %v296_v15  ;;  %v293_v25 = vsel %vm292_vm1, %v289_v16, %v291_v22  ;;  %v294_v26 = vsel %vm292_vm1, %v291_v22, %v289_v16 }
  0xb7   : > { %v302_v27 = vsel %vm839_vm2, %v300_v23, %v294_v26  ;;  %v303_v28 = vsel %vm843_vm3, %v301_v24, %v293_v25 }
  0xb8   : > { %v306_v29 = vcombine.low %v302_v27, %v303_v28 }
  0xb9   : > { %v264_v30 = vpop.permute.xlu1 %263  ;;  %v262_v31 = vpop.permute.xlu0 %261 }
  0xba   : > { %v313_v32 = vrot.slane %v306_v29, %v276_v21  ;;  %v266_v33 = vsel %vm265_vm4, %v262_v31, %v264_v30  ;;  %v267_v34 = vsel %vm265_vm4, %v264_v30, %v262_v31 }
  0xbb   : > { %v270_v35 = vcombine.low %v267_v34, %v266_v33 }
  0xbc   : > { %v320_v36 = vrot.slane %v313_v32, %v276_v21 }
  0xbd   : > { %v277_v37 = vrot.slane %v270_v35, %v276_v21  ;;  %v347_v38 = vpop.permute.xlu1 %346  ;;  %v345_v39 = vpop.permute.xlu0 %344 }
  0xbe   : > { %v322_v40 = vsub.f32 %v249_v4, %v320_v36  ;;  %v348_v45 = vsel %vm292_vm1, %v345_v39, %v347_v38  ;;  %v349_v46 = vsel %vm292_vm1, %v347_v38, %v345_v39 }
  0xbf   : > { %v284_v41 = vrot.slane %v277_v37, %v276_v21 }
  0xc0   : > { %v323_v47 = vand.u32 2147483647, %v322_v40 }
  0xc1   : > { %v286_v42 = vsub.f32 %v249_v4, %v284_v41  ;;  %v353_v43 = vpop.permute.xlu1 %352  ;;  %v351_v44 = vpop.permute.xlu0 %350 }
  0xc2   : > { %v354_v49 = vsel %vm299_vm0, %v351_v44, %v353_v43  ;;  %v355_v50 = vsel %vm299_vm0, %v353_v43, %v351_v44 }
  0xc3   : > { %v287_v48 = vand.u32 2147483647, %v286_v42  ;;  %v360_v54 = vsel %vm839_vm2, %v354_v49, %v349_v46  ;;  %v361_v55 = vsel %vm843_vm3, %v355_v50, %v348_v45 }
  0xc4   : > { %v364_v60 = vcombine.low %v360_v54, %v361_v55 }
  0xc5   : > { %v324_v51 = vadd.f32 %v323_v47, %v287_v48  ;;  %v335_v52 = vpop.permute.xlu1 %334  ;;  %v333_v53 = vpop.permute.xlu0 %332 }
  0xc6   : > { %v336_v56 = vsel %vm265_vm4, %v333_v53, %v335_v52  ;;  %v337_v57 = vsel %vm265_vm4, %v335_v52, %v333_v53  ;;  %v366_v62 = vsub.f32 %v832_v7, %v364_v60 }
  0xc7   : > { %v325_v58 = vmul.f32 -1.0, %v324_v51  ;;  %v340_v61 = vcombine.low %v337_v57, %v336_v56 }
  0xc8   : > { %v367_v0 = vand.u32 2147483647, %v366_v62 }
  0xc9   : > { %v326_v59 = vmul.f32 1.442695, %v325_v58  ;;  %v342_v63 = vsub.f32 %v832_v7, %v340_v61 }
  0xcb   : > { %584 = vpow2.f32 %v326_v59  ;;  %v343_v4 = vand.u32 2147483647, %v342_v63 }
  0xcd   : > { %v368_v5 = vadd.f32 %v367_v0, %v343_v4 }
  0xcf   : > { %v381_v10 = vcombine.high %v368_v5, %v368_v5 }
  0xd8   : > { %v585_v6 = vpop.eup %584 }
  0xd9   : > { %v373_v8 = vrot.slane %v585_v6, %v253_v2  ;;  %v377_v9 = vrot.slane %v585_v6, %v257_v3 }
  0xdb   : > { %v383_v11 = vmul.f32 %v373_v8, %v368_v5  ;;  %v384_v12 = vmul.f32 %v381_v10, %v377_v9 }
  0xdd   : > { %v386_v13 = vsel %vm385_vm5, %v383_v11, 0.0  ;;  %v387_v14 = vsel %vm385_vm5, %v384_v12, 0.0 }
  0xde   : > { %v388_v15 = vadd.f32 %v387_v14, %v386_v13 }
  0xe0   : > { %389 = vadd.xlane.f32.xlu0 %v388_v15 }
 0x169   : > { %v390_v7 = vpop.xlane.xlu0 %389 }
 0x16a   : > { %v391_v16 = vrot.slane %v390_v7, 4 }
 0x16c   : > { %v392_v17 = vadd.f32 %v391_v16, %v390_v7 }
 0x16e   : > { %v393_v18 = vrot.slane %v392_v17, 2 }
 0x170   : > { %v394_v19 = vadd.f32 %v393_v18, %v392_v17 }
 0x172   : > { %v395_v20 = vrot.slane %v394_v19, 1 }
 0x174   : > { %v396_v1 = vadd.f32 %v395_v20, %v394_v19 }
 0x176   : > { %398 = vst.msk [vmem:[%s219_s18] sm:$0x1] %vm397_vm6, %v396_v1 }
 0x177 PF: > { %s18_s14 = sadd.s32 1, %s696_s14   ;;  %s908_s9 = smov %s680_s10 }
 0x178   : > { %p15_p9 = scmp.ge.s32.totalorder %s18_s14, 4   ;;  %s909_s10 = smov %s684_s11 }
 0x179   : > { %s910_s11 = smov %s768_s21  ;;  %s911_s12 = smov %s692_s13 }
 0x17a   : > { %s912_s13 = smov %s914_s16  ;;  %17 = sbr.rel (!%p15_p9) target bundleno = 6 (0x6), region = 81 }
 0x17f   :  { %422 = vsyncpa [#allocation3], 1 }
 0x180   :  { %424 = vsyncpa [#allocation3 + $0x1], 1 }
 0x181   :  { %425 = vsyncpa [#allocation5], 1 }
 0x182   :  { %427 = vsyncpa [#allocation5 + $0x1], 1 }

</bundles_post_ra>
